<compile_context>
chip_gen: v7x
topology: tpu7x:2x2x1
jax: 0.10.0
libtpu: 0.0.40
codegen_flags: <defaults>
</compile_context>

<pallas_src>
import jax
import jax.numpy as jnp
from jax.experimental import pallas as pl
from jax.experimental.pallas import tpu as pltpu


def _round_up(x, m):
    return (x + m - 1) // m * m


# ----------------------------------------------------------------------------
# Kernel
# ----------------------------------------------------------------------------
def _rnn_agent_seq_kernel(x_ref, h0_ref,
                          w1_ref, b1_ref,
                          wxg_ref, whg_ref,
                          b_rz_ref, b_in_ref, b_hn_ref,
                          w2_ref, b2_ref,
                          q_ref, h_ref):
    """One (batch_block, timestep) grid cell.

    h_ref is the VMEM-resident carried hidden state: its output block index
    depends only on the batch-block axis, so it stays resident across all
    timesteps of a batch block and is written back to HBM exactly once.
    """
    H = w1_ref.shape[1]        # padded hidden dim (multiple of 128)
    t = pl.program_id(1)
    wd = w1_ref.dtype          # matmul operand dtype (bf16 by default)

    @pl.when(t == 0)
    def _init():
        h_ref[...] = h0_ref[...]

    h_prev = h_ref[...]        # f32 [B_blk, H]
    x = x_ref[0]               # f32 [B_blk, D_pad]

    # fc1 + ReLU (bf16 operands, f32 accumulation)
    x1 = jnp.dot(x.astype(wd), w1_ref[...],
                 preferred_element_type=jnp.float32) + b1_ref[...]
    x1 = jnp.maximum(x1, 0.0)

    # GRU gate pre-activations: two fused MXU matmuls over [r | z | n].
    # H is padded to 128, so all slices below land on 128-lane boundaries.
    gx = jnp.dot(x1.astype(wd), wxg_ref[...], preferred_element_type=jnp.float32)
    gh = jnp.dot(h_prev.astype(wd), whg_ref[...], preferred_element_type=jnp.float32)

    rz = jax.nn.sigmoid(gx[:, :2 * H] + gh[:, :2 * H] + b_rz_ref[...])
    r = rz[:, :H]
    z = rz[:, H:]
    n = jnp.tanh(gx[:, 2 * H:] + b_in_ref[...] + r * (gh[:, 2 * H:] + b_hn_ref[...]))
    h_new = (1.0 - z) * n + z * h_prev

    # fc2
    q = jnp.dot(h_new.astype(wd), w2_ref[...],
                preferred_element_type=jnp.float32) + b2_ref[...]

    q_ref[0] = q.astype(q_ref.dtype)
    h_ref[...] = h_new


# ----------------------------------------------------------------------------
# Wrappers
# ----------------------------------------------------------------------------
def rnn_agent_forward_sequence(x_seq, hidden_state, packed, *,
                               hidden_dim, output_dim):
    """Run T agent steps in a single pallas_call.

    x_seq: [T, B, input_dim] float32; hidden_state: reshapeable to [B, hidden_dim].
    Returns (q_seq [T, B, output_dim], h_final [B, hidden_dim]).
    """
    T, B, D = x_seq.shape
    D_pad, H_pad = packed["w1"].shape
    Q_pad = packed["w2"].shape[1]

    # Batch blocking: multiple of 8 sublanes; 128-row blocks when batch is big
    # (the batch-block axis is the "parallel" axis -> megacore sharding on v7x).
    B_blk = 128 if B >= 128 else _round_up(max(B, 1), 8)
    B_pad = _round_up(B, B_blk)
    nb = B_pad // B_blk

    x_pad = jnp.zeros((T, B_pad, D_pad), jnp.float32)
    x_pad = x_pad.at[:, :B, :D].set(x_seq.astype(jnp.float32))

    h0 = hidden_state.reshape(-1, hidden_dim).astype(jnp.float32)
    h0_pad = jnp.zeros((B_pad, H_pad), jnp.float32).at[:B, :hidden_dim].set(h0)

    grid_spec = pltpu.PrefetchScalarGridSpec(
        num_scalar_prefetch=0,
        grid=(nb, T),
        in_specs=[
            pl.BlockSpec((1, B_blk, D_pad), lambda b, t: (t, b, 0)),   # x_seq
            pl.BlockSpec((B_blk, H_pad), lambda b, t: (b, 0)),         # h0
            pl.BlockSpec((D_pad, H_pad), lambda b, t: (0, 0)),         # w1
            pl.BlockSpec((1, H_pad), lambda b, t: (0, 0)),             # b1
            pl.BlockSpec((H_pad, 3 * H_pad), lambda b, t: (0, 0)),     # w_x_gates
            pl.BlockSpec((H_pad, 3 * H_pad), lambda b, t: (0, 0)),     # w_h_gates
            pl.BlockSpec((1, 2 * H_pad), lambda b, t: (0, 0)),         # b_rz (folded)
            pl.BlockSpec((1, H_pad), lambda b, t: (0, 0)),             # b_in
            pl.BlockSpec((1, H_pad), lambda b, t: (0, 0)),             # b_hn
            pl.BlockSpec((H_pad, Q_pad), lambda b, t: (0, 0)),         # w2
            pl.BlockSpec((1, Q_pad), lambda b, t: (0, 0)),             # b2
        ],
        out_specs=(
            pl.BlockSpec((1, B_blk, Q_pad), lambda b, t: (t, b, 0)),   # q per step
            pl.BlockSpec((B_blk, H_pad), lambda b, t: (b, 0)),         # carried h
        ),
    )

    q_pad, h_pad = pl.pallas_call(
        _rnn_agent_seq_kernel,
        grid_spec=grid_spec,
        out_shape=(
            jax.ShapeDtypeStruct((T, B_pad, Q_pad), jnp.float32),
            jax.ShapeDtypeStruct((B_pad, H_pad), jnp.float32),
        ),
        input_output_aliases={1: 1},   # hidden-state buffer is updated in place
        compiler_params=pltpu.CompilerParams(
            dimension_semantics=("parallel", "arbitrary"),
            vmem_limit_bytes=32 * 1024 * 1024,
        ),
    )(x_pad, h0_pad,
      packed["w1"], packed["b1"],
      packed["w_x_gates"], packed["w_h_gates"],
      packed["b_rz"], packed["b_in"], packed["b_hn"],
      packed["w2"], packed["b2"])

    return q_pad[:, :B, :output_dim], h_pad[:B, :hidden_dim]


def rnn_agent_forward(inputs, hidden_state, packed, *, hidden_dim, output_dim):
    """Single-step forward: same signature/semantics as the PyTorch module."""
    q_seq, h = rnn_agent_forward_sequence(
        inputs[None], hidden_state, packed,
        hidden_dim=hidden_dim, output_dim=output_dim)
    return q_seq[0], h


# ----------------------------------------------------------------------------
# Parameters (PyTorch layout) and kernel packing
# ----------------------------------------------------------------------------
def init_params(key, input_dim, hidden_dim, output_dim):
    """PyTorch-layout parameters with PyTorch-style uniform(-1/sqrt(fan_in)) init."""
    ks = jax.random.split(key, 8)

    def u(k, shape, fan_in):
        bound = 1.0 / jnp.sqrt(float(fan_in))
        return jax.random.uniform(k, shape, jnp.float32, -bound, bound)

    H = hidden_dim
    return {
        "w1": u(ks[0], (H, input_dim), input_dim),   # fc1.weight  [H, D]
        "b1": u(ks[1], (H,), input_dim),             # fc1.bias
        "w_ih": u(ks[2], (3 * H, H), H),             # rnn.weight_ih (rows r|z|n)
        "b_ih": u(ks[3], (3 * H,), H),
        "w_hh": u(ks[4], (3 * H, H), H),             # rnn.weight_hh
        "b_hh": u(ks[5], (3 * H,), H),
        "w2": u(ks[6], (output_dim, H), H),          # fc2.weight  [out, H]
        "b2": u(ks[7], (output_dim,), H),
    }


def pack_params(params, input_dim, hidden_dim, output_dim,
                weight_dtype=jnp.bfloat16):
    """Convert PyTorch-layout params to the padded, lane-aligned kernel layout.

    Weights are transposed to [in, out], zero-padded so every feature dim is a
    multiple of 128 lanes, and cast to `weight_dtype`; biases stay float32.
    GRU weights become per-gate 128-aligned column blocks [r | z | n] and the
    r/z biases are pre-folded (b_ih + b_hh)."""
    H = hidden_dim
    D_pad = _round_up(input_dim, 128)
    H_pad = _round_up(hidden_dim, 128)
    Q_pad = _round_up(output_dim, 128)
    f32 = jnp.float32

    def pad_mat(w, rows, cols):
        return jnp.pad(w.astype(f32),
                       ((0, rows - w.shape[0]), (0, cols - w.shape[1])))

    def pad_vec(b, cols):
        return jnp.pad(b.astype(f32), (0, cols - b.shape[0])).reshape(1, cols)

    w1_t = params["w1"].T        # [D, H]
    w2_t = params["w2"].T        # [H, out]
    wih_t = params["w_ih"].T     # [H, 3H], column blocks r|z|n
    whh_t = params["w_hh"].T

    def gate_blocks(w):          # -> [H_pad, 3*H_pad], each gate 128-aligned
        r, z, n = w[:, :H], w[:, H:2 * H], w[:, 2 * H:]
        return jnp.concatenate([pad_mat(g, H_pad, H_pad) for g in (r, z, n)],
                               axis=1)

    b_ih, b_hh = params["b_ih"], params["b_hh"]
    b_rz = jnp.concatenate(
        [pad_vec(b_ih[:H] + b_hh[:H], H_pad),
         pad_vec(b_ih[H:2 * H] + b_hh[H:2 * H], H_pad)], axis=1)

    return {
        "w1": pad_mat(w1_t, D_pad, H_pad).astype(weight_dtype),
        "b1": pad_vec(params["b1"], H_pad),
        "w_x_gates": gate_blocks(wih_t).astype(weight_dtype),
        "w_h_gates": gate_blocks(whh_t).astype(weight_dtype),
        "b_rz": b_rz,
        "b_in": pad_vec(b_ih[2 * H:], H_pad),
        "b_hn": pad_vec(b_hh[2 * H:], H_pad),
        "w2": pad_mat(w2_t, H_pad, Q_pad).astype(weight_dtype),
        "b2": pad_vec(params["b2"], Q_pad),
    }


# ----------------------------------------------------------------------------
# Pure-JAX reference (the PyTorch forward applied per timestep)
# ----------------------------------------------------------------------------
def _reference_forward_sequence(x_seq, hidden_state, params, hidden_dim,
                                weight_dtype=jnp.float32):
    """Module-faithful reference. Matmul operands are rounded through
    `weight_dtype` to mirror the kernel's storage precision; accumulation and
    all gate math are float32 (exactly the module math when weight_dtype=f32)."""
    H = hidden_dim
    f32 = jnp.float32
    hp = jax.lax.Precision.HIGHEST

    def rd(a):
        return a.astype(weight_dtype).astype(f32)

    def dot(a, w):
        return jnp.dot(rd(a), rd(w), preferred_element_type=f32, precision=hp)

    h = hidden_state.reshape(-1, H).astype(f32)
    qs = []
    for t in range(x_seq.shape[0]):
        x = x_seq[t].astype(f32)
        x1 = jnp.maximum(dot(x, params["w1"].T) + params["b1"], 0.0)
        gi = dot(x1, params["w_ih"].T) + params["b_ih"]
        gh = dot(h, params["w_hh"].T) + params["b_hh"]
        r = jax.nn.sigmoid(gi[:, :H] + gh[:, :H])
        z = jax.nn.sigmoid(gi[:, H:2 * H] + gh[:, H:2 * H])
        n = jnp.tanh(gi[:, 2 * H:] + r * gh[:, 2 * H:])
        h = (1.0 - z) * n + z * h
        qs.append(dot(h, params["w2"].T) + params["b2"])
    return jnp.stack(qs, axis=0), h


# ----------------------------------------------------------------------------
if __name__ == "__main__":
    batch = 8
    seq_len = 8
    input_dim = 32       # flat (non-image) observation size
    hidden_dim = 32      # args.rnn_hidden_dim
    output_dim = 16      # number of actions / q-values

    key = jax.random.PRNGKey(0)
    k_p, k_x, k_h = jax.random.split(key, 3)

    params = init_params(k_p, input_dim, hidden_dim, output_dim)
    x_seq = jax.random.normal(k_x, (seq_len, batch, input_dim), jnp.float32)
    # init_hidden() is zeros(1, H) broadcast to batch; perturb so z*h_in is exercised.
    hidden_state = 0.1 * jax.random.normal(k_h, (batch, hidden_dim), jnp.float32)

    # --- optimized bf16-weight rollout (default fast path) -------------------
    packed_bf16 = pack_params(params, input_dim, hidden_dim, output_dim,
                              weight_dtype=jnp.bfloat16)
    q_seq, h_final = rnn_agent_forward_sequence(
        x_seq, hidden_state, packed_bf16,
        hidden_dim=hidden_dim, output_dim=output_dim)
    q_seq = jax.block_until_ready(q_seq)
    h_final = jax.block_until_ready(h_final)

    q_ref, h_ref = _reference_forward_sequence(
        x_seq, hidden_state, params, hidden_dim, weight_dtype=jnp.bfloat16)
    assert jnp.allclose(q_seq, q_ref, atol=1e-3, rtol=1e-3)
    assert jnp.allclose(h_final, h_ref, atol=1e-3, rtol=1e-3)

    # --- f32-weight path matches the exact module numerics -------------------
    packed_f32 = pack_params(params, input_dim, hidden_dim, output_dim,
                             weight_dtype=jnp.float32)
    q_seq32, h_final32 = rnn_agent_forward_sequence(
        x_seq, hidden_state, packed_f32,
        hidden_dim=hidden_dim, output_dim=output_dim)
    q_seq32 = jax.block_until_ready(q_seq32)
    q_ref32, h_ref32 = _reference_forward_sequence(
        x_seq, hidden_state, params, hidden_dim, weight_dtype=jnp.float32)
    assert jnp.allclose(q_seq32, q_ref32, atol=1e-4, rtol=1e-4)
    assert jnp.allclose(h_final32, h_ref32, atol=1e-4, rtol=1e-4)

    # --- single-step call, same signature as the PyTorch module forward ------
    q1, h1 = rnn_agent_forward(x_seq[0], hidden_state, packed_f32,
                               hidden_dim=hidden_dim, output_dim=output_dim)
    q1 = jax.block_until_ready(q1)
    q1_ref, h1_ref = _reference_forward_sequence(
        x_seq[:1], hidden_state, params, hidden_dim, weight_dtype=jnp.float32)
    assert jnp.allclose(q1, q1_ref[0], atol=1e-4, rtol=1e-4)
    assert jnp.allclose(h1, h1_ref, atol=1e-4, rtol=1e-4)

    # TODO(synk): image branch (Conv2d + Flatten before fc1, args.is_obs_image
    # = True) is not implemented; this kernel covers the vector-obs path only.
    print("KERNEL_OK")
</pallas_src>

<mosaic_0001>
module attributes {stable_mosaic.version = 11 : i64} {
  func.func @_rnn_agent_seq_kernel(%arg0: i32, %arg1: i32, %arg2: memref<1x8x128xf32, #tpu.memory_space<vmem>>, %arg3: memref<8x128xf32, #tpu.memory_space<vmem>>, %arg4: memref<128x128xbf16, #tpu.memory_space<vmem>>, %arg5: memref<1x128xf32, #tpu.memory_space<vmem>>, %arg6: memref<128x384xbf16, #tpu.memory_space<vmem>>, %arg7: memref<128x384xbf16, #tpu.memory_space<vmem>>, %arg8: memref<1x256xf32, #tpu.memory_space<vmem>>, %arg9: memref<1x128xf32, #tpu.memory_space<vmem>>, %arg10: memref<1x128xf32, #tpu.memory_space<vmem>>, %arg11: memref<128x128xbf16, #tpu.memory_space<vmem>>, %arg12: memref<1x128xf32, #tpu.memory_space<vmem>>, %arg13: memref<1x8x128xf32, #tpu.memory_space<vmem>>, %arg14: memref<8x128xf32, #tpu.memory_space<vmem>>) attributes {dimension_semantics = [#tpu.dimension_semantics<parallel>, #tpu.dimension_semantics<arbitrary>], iteration_bounds = array<i64: 1, 8>, scalar_prefetch = 0 : i64, scratch_operands = 0 : i64, tpu.core_type = #tpu.core_type<tc>, window_params = [{transform_indices = @transform_0, window_bounds = array<i64: 1, 8, 128>}, {transform_indices = @transform_1, window_bounds = array<i64: 8, 128>}, {pipeline_mode = #tpu.pipeline_mode<synchronous>, transform_indices = @transform_2, window_bounds = array<i64: 128, 128>}, {pipeline_mode = #tpu.pipeline_mode<synchronous>, transform_indices = @transform_3, window_bounds = array<i64: 1, 128>}, {pipeline_mode = #tpu.pipeline_mode<synchronous>, transform_indices = @transform_4, window_bounds = array<i64: 128, 384>}, {pipeline_mode = #tpu.pipeline_mode<synchronous>, transform_indices = @transform_5, window_bounds = array<i64: 128, 384>}, {pipeline_mode = #tpu.pipeline_mode<synchronous>, transform_indices = @transform_6, window_bounds = array<i64: 1, 256>}, {pipeline_mode = #tpu.pipeline_mode<synchronous>, transform_indices = @transform_7, window_bounds = array<i64: 1, 128>}, {pipeline_mode = #tpu.pipeline_mode<synchronous>, transform_indices = @transform_8, window_bounds = array<i64: 1, 128>}, {pipeline_mode = #tpu.pipeline_mode<synchronous>, transform_indices = @transform_9, window_bounds = array<i64: 128, 128>}, {pipeline_mode = #tpu.pipeline_mode<synchronous>, transform_indices = @transform_10, window_bounds = array<i64: 1, 128>}, {transform_indices = @transform_11, window_bounds = array<i64: 1, 8, 128>}, {transform_indices = @transform_12, window_bounds = array<i64: 8, 128>}]} {
    %c0_i32 = arith.constant 0 : i32
    %0 = arith.cmpi eq, %arg1, %c0_i32 : i32
    %1 = arith.extui %0 : i1 to i32
    %c0_i32_0 = arith.constant 0 : i32
    %2 = arith.cmpi ne, %1, %c0_i32_0 : i32
    scf.if %2 {
      %c0_34 = arith.constant 0 : index
      %c0_35 = arith.constant 0 : index
      %59 = vector.load %arg3[%c0_34, %c0_35] : memref<8x128xf32, #tpu.memory_space<vmem>>, vector<8x128xf32>
      %c0_36 = arith.constant 0 : index
      %c0_37 = arith.constant 0 : index
      %60 = vector.load %arg14[%c0_36, %c0_37] : memref<8x128xf32, #tpu.memory_space<vmem>>, vector<8x128xf32>
      tpu.vector_store %arg14[%c0_36, %c0_37], %59 {strides = array<i32>} : memref<8x128xf32, #tpu.memory_space<vmem>>, vector<8x128xf32>,
    } else {
    }
    %c0 = arith.constant 0 : index
    %c0_1 = arith.constant 0 : index
    %3 = vector.load %arg14[%c0, %c0_1] : memref<8x128xf32, #tpu.memory_space<vmem>>, vector<8x128xf32>
    %c0_2 = arith.constant 0 : index
    %c0_3 = arith.constant 0 : index
    %c0_4 = arith.constant 0 : index
    %4 = vector.load %arg2[%c0_2, %c0_3, %c0_4] : memref<1x8x128xf32, #tpu.memory_space<vmem>>, vector<1x8x128xf32>
    %5 = vector.shape_cast %4 : vector<1x8x128xf32> to vector<8x128xf32>
    %6 = arith.truncf %5 : vector<8x128xf32> to vector<8x128xbf16>
    %c0_5 = arith.constant 0 : index
    %c0_6 = arith.constant 0 : index
    %7 = vector.load %arg4[%c0_5, %c0_6] : memref<128x128xbf16, #tpu.memory_space<vmem>>, vector<128x128xbf16>
    %cst = arith.constant dense<0.000000e+00> : vector<8x128xf32>
    %8 = tpu.matmul %6, %7, %cst {dimension_numbers = #tpu.dot_dimension_numbers<[1], [0], [0], [1], [0, 0, 1, 1], [], []>} : vector<8x128xbf16>, vector<128x128xbf16>, vector<8x128xf32> -> vector<8x128xf32>
    %c0_7 = arith.constant 0 : index
    %c0_8 = arith.constant 0 : index
    %9 = vector.load %arg5[%c0_7, %c0_8] : memref<1x128xf32, #tpu.memory_space<vmem>>, vector<1x128xf32>
    %10 = vector.broadcast %9 : vector<1x128xf32> to vector<8x128xf32>
    %11 = arith.addf %8, %10 : vector<8x128xf32>
    %cst_9 = arith.constant 0.000000e+00 : f32
    %12 = vector.broadcast %cst_9 : f32 to vector<8x128xf32>
    %13 = arith.maximumf %11, %12 : vector<8x128xf32>
    %14 = arith.truncf %13 : vector<8x128xf32> to vector<8x128xbf16>
    %c0_10 = arith.constant 0 : index
    %c0_11 = arith.constant 0 : index
    %15 = vector.load %arg6[%c0_10, %c0_11] : memref<128x384xbf16, #tpu.memory_space<vmem>>, vector<128x384xbf16>
    %cst_12 = arith.constant dense<0.000000e+00> : vector<8x384xf32>
    %16 = tpu.matmul %14, %15, %cst_12 {dimension_numbers = #tpu.dot_dimension_numbers<[1], [0], [0], [1], [0, 0, 1, 1], [], []>} : vector<8x128xbf16>, vector<128x384xbf16>, vector<8x384xf32> -> vector<8x384xf32>
    %17 = arith.truncf %3 : vector<8x128xf32> to vector<8x128xbf16>
    %c0_13 = arith.constant 0 : index
    %c0_14 = arith.constant 0 : index
    %18 = vector.load %arg7[%c0_13, %c0_14] : memref<128x384xbf16, #tpu.memory_space<vmem>>, vector<128x384xbf16>
    %cst_15 = arith.constant dense<0.000000e+00> : vector<8x384xf32>
    %19 = tpu.matmul %17, %18, %cst_15 {dimension_numbers = #tpu.dot_dimension_numbers<[1], [0], [0], [1], [0, 0, 1, 1], [], []>} : vector<8x128xbf16>, vector<128x384xbf16>, vector<8x384xf32> -> vector<8x384xf32>
    %20 = vector.extract_strided_slice %16 {offsets = [0, 0], sizes = [8, 256], strides = [1, 1]} : vector<8x384xf32> to vector<8x256xf32>
    %21 = vector.extract_strided_slice %19 {offsets = [0, 0], sizes = [8, 256], strides = [1, 1]} : vector<8x384xf32> to vector<8x256xf32>
    %22 = arith.addf %20, %21 : vector<8x256xf32>
    %c0_16 = arith.constant 0 : index
    %c0_17 = arith.constant 0 : index
    %23 = vector.load %arg8[%c0_16, %c0_17] : memref<1x256xf32, #tpu.memory_space<vmem>>, vector<1x256xf32>
    %24 = vector.broadcast %23 : vector<1x256xf32> to vector<8x256xf32>
    %25 = arith.addf %22, %24 : vector<8x256xf32>
    %26 = arith.negf %25 : vector<8x256xf32>
    %27 = math.exp %26 : vector<8x256xf32>
    %cst_18 = arith.constant 1.000000e+00 : f32
    %28 = vector.broadcast %cst_18 : f32 to vector<8x256xf32>
    %29 = arith.addf %28, %27 : vector<8x256xf32>
    %30 = arith.divf %28, %29 : vector<8x256xf32>
    %31 = vector.extract_strided_slice %30 {offsets = [0, 0], sizes = [8, 128], strides = [1, 1]} : vector<8x256xf32> to vector<8x128xf32>
    %32 = vector.extract_strided_slice %30 {offsets = [0, 128], sizes = [8, 128], strides = [1, 1]} : vector<8x256xf32> to vector<8x128xf32>
    %33 = vector.extract_strided_slice %16 {offsets = [0, 256], sizes = [8, 128], strides = [1, 1]} : vector<8x384xf32> to vector<8x128xf32>
    %c0_19 = arith.constant 0 : index
    %c0_20 = arith.constant 0 : index
    %34 = vector.load %arg9[%c0_19, %c0_20] : memref<1x128xf32, #tpu.memory_space<vmem>>, vector<1x128xf32>
    %35 = vector.broadcast %34 : vector<1x128xf32> to vector<8x128xf32>
    %36 = arith.addf %33, %35 : vector<8x128xf32>
    %37 = vector.extract_strided_slice %19 {offsets = [0, 256], sizes = [8, 128], strides = [1, 1]} : vector<8x384xf32> to vector<8x128xf32>
    %c0_21 = arith.constant 0 : index
    %c0_22 = arith.constant 0 : index
    %38 = vector.load %arg10[%c0_21, %c0_22] : memref<1x128xf32, #tpu.memory_space<vmem>>, vector<1x128xf32>
    %39 = vector.broadcast %38 : vector<1x128xf32> to vector<8x128xf32>
    %40 = arith.addf %37, %39 : vector<8x128xf32>
    %41 = arith.mulf %31, %40 : vector<8x128xf32>
    %42 = arith.addf %36, %41 : vector<8x128xf32>
    %43 = math.tanh %42 : vector<8x128xf32>
    %cst_23 = arith.constant 1.000000e+00 : f32
    %44 = vector.broadcast %cst_23 : f32 to vector<8x128xf32>
    %45 = arith.subf %44, %32 : vector<8x128xf32>
    %46 = arith.mulf %45, %43 : vector<8x128xf32>
    %47 = arith.mulf %32, %3 : vector<8x128xf32>
    %48 = arith.addf %46, %47 : vector<8x128xf32>
    %49 = arith.truncf %48 : vector<8x128xf32> to vector<8x128xbf16>
    %c0_24 = arith.constant 0 : index
    %c0_25 = arith.constant 0 : index
    %50 = vector.load %arg11[%c0_24, %c0_25] : memref<128x128xbf16, #tpu.memory_space<vmem>>, vector<128x128xbf16>
    %cst_26 = arith.constant dense<0.000000e+00> : vector<8x128xf32>
    %51 = tpu.matmul %49, %50, %cst_26 {dimension_numbers = #tpu.dot_dimension_numbers<[1], [0], [0], [1], [0, 0, 1, 1], [], []>} : vector<8x128xbf16>, vector<128x128xbf16>, vector<8x128xf32> -> vector<8x128xf32>
    %c0_27 = arith.constant 0 : index
    %c0_28 = arith.constant 0 : index
    %52 = vector.load %arg12[%c0_27, %c0_28] : memref<1x128xf32, #tpu.memory_space<vmem>>, vector<1x128xf32>
    %53 = vector.broadcast %52 : vector<1x128xf32> to vector<8x128xf32>
    %54 = arith.addf %51, %53 : vector<8x128xf32>
    %c0_29 = arith.constant 0 : index
    %c0_30 = arith.constant 0 : index
    %c0_31 = arith.constant 0 : index
    %55 = vector.load %arg13[%c0_29, %c0_30, %c0_31] : memref<1x8x128xf32, #tpu.memory_space<vmem>>, vector<1x8x128xf32>
    %56 = vector.shape_cast %55 : vector<1x8x128xf32> to vector<8x128xf32>
    %57 = vector.shape_cast %54 : vector<8x128xf32> to vector<1x8x128xf32>
    tpu.vector_store %arg13[%c0_29, %c0_30, %c0_31], %57 {strides = array<i32>} : memref<1x8x128xf32, #tpu.memory_space<vmem>>, vector<1x8x128xf32>,
    %c0_32 = arith.constant 0 : index
    %c0_33 = arith.constant 0 : index
    %58 = vector.load %arg14[%c0_32, %c0_33] : memref<8x128xf32, #tpu.memory_space<vmem>>, vector<8x128xf32>
    tpu.vector_store %arg14[%c0_32, %c0_33], %48 {strides = array<i32>} : memref<8x128xf32, #tpu.memory_space<vmem>>, vector<8x128xf32>,
    return
  }
  func.func @transform_0(%arg0: i32, %arg1: i32) -> (i32, i32, i32) {
    %c0_i32 = arith.constant 0 : i32
    %c0_i32_0 = arith.constant 0 : i32
    return %arg1, %arg0, %c0_i32 : i32, i32, i32
  }
  func.func @transform_1(%arg0: i32, %arg1: i32) -> (i32, i32) {
    %c0_i32 = arith.constant 0 : i32
    %c0_i32_0 = arith.constant 0 : i32
    return %arg0, %c0_i32 : i32, i32
  }
  func.func @transform_2(%arg0: i32, %arg1: i32) -> (i32, i32) {
    %c0_i32 = arith.constant 0 : i32
    %c0_i32_0 = arith.constant 0 : i32
    %c0_i32_1 = arith.constant 0 : i32
    return %c0_i32, %c0_i32_0 : i32, i32
  }
  func.func @transform_3(%arg0: i32, %arg1: i32) -> (i32, i32) {
    %c0_i32 = arith.constant 0 : i32
    %c0_i32_0 = arith.constant 0 : i32
    %c0_i32_1 = arith.constant 0 : i32
    return %c0_i32, %c0_i32_0 : i32, i32
  }
  func.func @transform_4(%arg0: i32, %arg1: i32) -> (i32, i32) {
    %c0_i32 = arith.constant 0 : i32
    %c0_i32_0 = arith.constant 0 : i32
    %c0_i32_1 = arith.constant 0 : i32
    return %c0_i32, %c0_i32_0 : i32, i32
  }
  func.func @transform_5(%arg0: i32, %arg1: i32) -> (i32, i32) {
    %c0_i32 = arith.constant 0 : i32
    %c0_i32_0 = arith.constant 0 : i32
    %c0_i32_1 = arith.constant 0 : i32
    return %c0_i32, %c0_i32_0 : i32, i32
  }
  func.func @transform_6(%arg0: i32, %arg1: i32) -> (i32, i32) {
    %c0_i32 = arith.constant 0 : i32
    %c0_i32_0 = arith.constant 0 : i32
    %c0_i32_1 = arith.constant 0 : i32
    return %c0_i32, %c0_i32_0 : i32, i32
  }
  func.func @transform_7(%arg0: i32, %arg1: i32) -> (i32, i32) {
    %c0_i32 = arith.constant 0 : i32
    %c0_i32_0 = arith.constant 0 : i32
    %c0_i32_1 = arith.constant 0 : i32
    return %c0_i32, %c0_i32_0 : i32, i32
  }
  func.func @transform_8(%arg0: i32, %arg1: i32) -> (i32, i32) {
    %c0_i32 = arith.constant 0 : i32
    %c0_i32_0 = arith.constant 0 : i32
    %c0_i32_1 = arith.constant 0 : i32
    return %c0_i32, %c0_i32_0 : i32, i32
  }
  func.func @transform_9(%arg0: i32, %arg1: i32) -> (i32, i32) {
    %c0_i32 = arith.constant 0 : i32
    %c0_i32_0 = arith.constant 0 : i32
    %c0_i32_1 = arith.constant 0 : i32
    return %c0_i32, %c0_i32_0 : i32, i32
  }
  func.func @transform_10(%arg0: i32, %arg1: i32) -> (i32, i32) {
    %c0_i32 = arith.constant 0 : i32
    %c0_i32_0 = arith.constant 0 : i32
    %c0_i32_1 = arith.constant 0 : i32
    return %c0_i32, %c0_i32_0 : i32, i32
  }
  func.func @transform_11(%arg0: i32, %arg1: i32) -> (i32, i32, i32) {
    %c0_i32 = arith.constant 0 : i32
    %c0_i32_0 = arith.constant 0 : i32
    return %arg1, %arg0, %c0_i32 : i32, i32, i32
  }
  func.func @transform_12(%arg0: i32, %arg1: i32) -> (i32, i32) {
    %c0_i32 = arith.constant 0 : i32
    %c0_i32_0 = arith.constant 0 : i32
    return %arg0, %c0_i32 : i32, i32
  }
}

</mosaic_0001>

<bundles_post_ra>
// kernel: tpu_custom_call.1
= control target key start
LH: loop header
LB: loop body
LE: loop exit
PB: predicated region body
PF: predicated region fallthrough
CT: control target
= control target key end

     0   :  { %s2691_s0 = inlined_call_operand.hbm [shape: f32[8,8,128], index: 0, kind: input, shape index: {}]   ;;  %s2692_s1 = inlined_call_operand.hbm [shape: f32[8,128], index: 1, kind: input, shape index: {}, may-alias: {1,12}]   ;;  %s2693_s2 = inlined_call_operand.hbm [shape: bf16[128,128], index: 2, kind: input, shape index: {}]   ;;  %s2694_s3 = inlined_call_operand.vmem [shape: f32[1,128], index: 3, kind: input, shape index: {}]   ;;  %s2695_s4 = inlined_call_operand.hbm [shape: bf16[128,384], index: 4, kind: input, shape index: {}]   ;;  %s2696_s5 = inlined_call_operand.hbm [shape: bf16[128,384], index: 5, kind: input, shape index: {}]   ;;  %s2697_s6 = inlined_call_operand.vmem [shape: f32[1,256], index: 6, kind: input, shape index: {}]   ;;  %s2698_s7 = inlined_call_operand.vmem [shape: f32[1,128], index: 7, kind: input, shape index: {}]   ;;  %s2699_s8 = inlined_call_operand.vmem [shape: f32[1,128], index: 8, kind: input, shape index: {}]   ;;  %s2700_s9 = inlined_call_operand.hbm [shape: bf16[128,128], index: 9, kind: input, shape index: {}]   ;;  %s2701_s10 = inlined_call_operand.vmem [shape: f32[1,128], index: 10, kind: input, shape index: {}]   ;;  %s2702_s11 = inlined_call_operand.hbm [shape: f32[8,8,128], index: 11, kind: output, shape index: {0}]   ;;  %s2703_s12 = inlined_call_operand.hbm [shape: f32[8,128], index: 12, kind: output, shape index: {1}, may-alias: {1,12}]  }
   0x1   :  { %2715 = sst [smem:[#allocation22_spill]] %s2692_s1 }
   0x2   :  { %2716 = sst [smem:[#allocation23_spill]] %s2695_s4 }
   0x3   :  { %2717 = sst [smem:[#allocation24_spill]] %s2697_s6 }
   0x4   :  { %2718 = sst [smem:[#allocation25_spill]] %s2698_s7 }
   0x5   :  { %2719 = sst [smem:[#allocation26_spill]] %s2699_s8 }
   0x6   :  { %2720 = sst [smem:[#allocation27_spill]] %s2701_s10 }
   0x7   :  { %2721 = sst [smem:[#allocation28_spill]] %s2702_s11 }
   0x8   :  { %2722 = sst [smem:[#allocation29_spill]] %s2703_s12 }
   0x9   :  { %18 = vsyncpa [#allocation3], 0 }
   0xa   :  { %20 = vsyncpa [#allocation3 + $0x1], 0 }
   0xb   :  { %21 = vsyncpa [#allocation6], 0 }
   0xc   :  { %22 = vsyncpa [#allocation9], 0 }
   0xd   :  { %23 = vsyncpa [#allocation12], 0 }
   0xe   :  { %24 = vsyncpa [#allocation4], 0 }
   0xf   :  { %26 = vsyncpa [#allocation4 + $0x1], 0 }
  0x10   :  { %27 = vsyncpa [#allocation15], 0  ;;  %s2275_s21 = smov 0   ;;  %s2277_s22 = smov 0  }
  0x11   :  { %s2279_s23 = smov 0   ;;  %s2281_s24 = smov 0  }
  0x12   :  { %s2283_s25 = smov 0   ;;  %s2285_s26 = smov 0  }
  0x13 LB: > { %s2704_s27 = sadd.s32 4294967295, %s2193_s26   ;;  %p1472_p0 = scmp.ge.s32.totalorder %s2193_s26, 1  ;;  %s2193_s26 = sphi %s2285_s26, %s33_s26   ;;  %s2189_s25 = sphi %s2283_s25, %s2754_s25   ;;  %s2185_s24 = sphi %s2281_s24, %s2753_s24   ;;  %s2181_s23 = sphi %s2279_s23, %s2752_s23   ;;  %s2177_s22 = sphi %s2277_s22, %s2751_s22   ;;  %s2173_s21 = sphi %s2275_s21, %s2750_s21  }
  0x14   : > { %p2309_p1 = scmp.eq.s32.totalorder %s2704_s27, 0  ;;  %p347_p2 = scmp.lt.s32.totalorder %s2193_s26, 9 }
  0x15   : > { %s2195_s30 = smov [#allocation5]   ;;  %s2196_s14 = smov [#allocation8]  }
  0x16   : > { %s2723_s28 = scalar_select %p2309_p1, 1, 0 }
  0x17   : > { %p2314_p3 = pnand %p1472_p0, %p347_p2  ;;  %s362_s13 = sshll.u32 %s2195_s30, 4  ;;  %s363_s13 = int_to_ptr.vmem [resolvable:$true] %s362_s13 }
  0x18   : > { %s388_s15 = sshll.u32 %s2196_s14, 4  ;;  %s2197_s17 = smov [#allocation7]   ;;  %s2326_s15 = int_to_ptr.vmem [resolvable:$true] %s388_s15 }
  0x19   : > { %s2724_s29 = scalar_select %p2314_p3, 1, 0 }
  0x1a   : > { %p1710_p4 = pneg %p2314_p3  ;;  %s2328_s18 = sshll.u32 %s2197_s17, 4  ;;  %s373_s18 = int_to_ptr.vmem [resolvable:$true] %s2328_s18 }
  0x1b   : > { %s2726_s1 = sld [smem:[#allocation22_spill]] }
  0x1c   : > { %p2322_p5 = pnand %p1710_p4, %p2309_p1 }
  0x1e   : > { %p2338_p7 = pneg %p2322_p5 }
  0x21   : > { %s1899_s30 = scalar_lea.hbm %s2726_s1, 128 }
  0x22   : > { %p1900_p6 = scmp.ne.s32.totalorder %s2726_s1, %s1899_s30  ;;  %p1906_p10 = scmp.lt.u32.totalorder %s1899_s30, %s2726_s1 }
  0x24   : > { %p1902_p8 = pnand %p2338_p7, %p1900_p6 }
  0x26   : > { %p1903_p9 = pneg %p1902_p8 }
  0x28   : > { %p1908_p11 = pnand %p1906_p10, %p1903_p9 }
  0x2a   : > { %1911 = shalt.err (!%p1908_p11)
}
  0x2b   : > { %s1912_s19 = scalar_lea.vmem %s363_s13, 128  ;;  %p1920_p2 = scmp.lt.s32.totalorder %s363_s13, %s363_s13 }
  0x2c   : > { %p1913_p12 = scmp.ne.s32.totalorder %s363_s13, %s1912_s19  ;;  %p1921_p4 = scmp.lt.s32.totalorder %s1912_s19, %s1912_s19 }
  0x2e   : > { %p1915_p13 = pnand %p1913_p12, %p2338_p7  ;;  %p1922_p3 = por %p1921_p4, %p1920_p2 }
  0x30   : > { %p1916_p0 = pneg %p1915_p13 }
  0x32   : > { %p1923_p1 = pnand %p1922_p3, %p1916_p0 }
  0x34   : > { %1926 = shalt.err (!%p1923_p1)
}
  0x35   : > { %1713 = dma.hbm_to_vmem [thread:$0]  (!%p2322_p5), %s2726_s1, 128, %s363_s13, [#allocation6]  }
  0x36   : > { %s2728_s4 = sld [smem:[#allocation23_spill]] }
  0x3c   : > { %s1927_s30 = scalar_lea.hbm %s2728_s4, 3072 }
  0x3d   : > { %p1928_p6 = scmp.ne.s32.totalorder %s2728_s4, %s1927_s30  ;;  %p1934_p1 = scmp.lt.u32.totalorder %s1927_s30, %s2728_s4 }
  0x3f   : > { %p1930_p8 = pnand %p1928_p6, %p2338_p7 }
  0x41   : > { %p1931_p9 = pneg %p1930_p8 }
  0x43   : > { %p1936_p3 = pnand %p1934_p1, %p1931_p9 }
  0x45   : > { %1939 = shalt.err (!%p1936_p3)
}
  0x46   : > { %s1940_s13 = scalar_lea.vmem %s2326_s15, 3072  ;;  %p1948_p13 = scmp.lt.s32.totalorder %s2326_s15, %s2326_s15 }
  0x47   : > { %p1941_p10 = scmp.ne.s32.totalorder %s2326_s15, %s1940_s13  ;;  %p1949_p0 = scmp.lt.s32.totalorder %s1940_s13, %s1940_s13 }
  0x49   : > { %p1943_p11 = pnand %p1941_p10, %p2338_p7  ;;  %p1950_p2 = por %p1949_p0, %p1948_p13 }
  0x4b   : > { %p1944_p12 = pneg %p1943_p11 }
  0x4d   : > { %p1951_p4 = pnand %p1950_p2, %p1944_p12 }
  0x4f   : > { %1954 = shalt.err (!%p1951_p4)
}
  0x50   : > { %s2710_s12 = smov 192   ;;  %s2711_s7 = smov 12  }
  0x51   : > { %1719 = dma.hbm_to_vmem [thread:$0]  (!%p2322_p5), %s2728_s4, 3072, %s2326_s15, [#allocation9], %s2710_s12, %s2710_s12, %s2711_s7  }
  0x52   : > { %s1955_s30 = scalar_lea.hbm %s2693_s2, 1024 }
  0x53   : > { %p1956_p6 = scmp.ne.s32.totalorder %s2693_s2, %s1955_s30  ;;  %p1962_p1 = scmp.lt.u32.totalorder %s1955_s30, %s2693_s2 }
  0x55   : > { %p1958_p8 = pnand %p1956_p6, %p2338_p7 }
  0x57   : > { %p1959_p9 = pneg %p1958_p8 }
  0x59   : > { %p1964_p3 = pnand %p1962_p1, %p1959_p9 }
  0x5b   : > { %1967 = shalt.err (!%p1964_p3)
}
  0x5c   : > { %s1968_s11 = scalar_lea.vmem %s373_s18, 1024  ;;  %p1976_p13 = scmp.lt.s32.totalorder %s373_s18, %s373_s18 }
  0x5d   : > { %p1969_p10 = scmp.ne.s32.totalorder %s373_s18, %s1968_s11  ;;  %p1977_p0 = scmp.lt.s32.totalorder %s1968_s11, %s1968_s11 }
  0x5f   : > { %p1971_p11 = pnand %p1969_p10, %p2338_p7  ;;  %p1978_p2 = por %p1977_p0, %p1976_p13 }
  0x61   : > { %p1972_p12 = pneg %p1971_p11 }
  0x63   : > { %p1979_p4 = pnand %p1978_p2, %p1972_p12 }
  0x65   : > { %1982 = shalt.err (!%p1979_p4)
}
  0x66   : > { %s2200_s15 = smov 64   ;;  %s2201_s27 = smov 4  }
  0x67   : > { %1716 = dma.hbm_to_vmem [thread:$0]  (!%p2322_p5), %s2693_s2, 1024, %s373_s18, [#allocation6], %s2200_s15, %s2200_s15, %s2201_s27  }
  0x68   : > { %s2202_s20 = smov [#allocation10]   ;;  %s2203_s17 = smov [#allocation11]  }
  0x69   : > { %s401_s30 = sshll.u32 %s2202_s20, 4  ;;  %s423_s19 = sshll.u32 %s2203_s17, 4  ;;  %s402_s30 = int_to_ptr.vmem [resolvable:$true] %s401_s30  ;;  %s424_s19 = int_to_ptr.vmem [resolvable:$true] %s423_s19 }
  0x6a   : > { %s1983_s12 = scalar_lea.hbm %s2696_s5, 3072 }
  0x6b   : > { %p1984_p6 = scmp.ne.s32.totalorder %s2696_s5, %s1983_s12  ;;  %p1990_p1 = scmp.lt.u32.totalorder %s1983_s12, %s2696_s5 }
  0x6d   : > { %p1986_p8 = pnand %p1984_p6, %p2338_p7 }
  0x6f   : > { %p1987_p9 = pneg %p1986_p8 }
  0x71   : > { %p1992_p3 = pnand %p1990_p1, %p1987_p9 }
  0x73   : > { %1995 = shalt.err (!%p1992_p3)
}
  0x74   : > { %s1996_s18 = scalar_lea.vmem %s402_s30, 3072  ;;  %p2004_p13 = scmp.lt.s32.totalorder %s402_s30, %s402_s30 }
  0x75   : > { %p1997_p10 = scmp.ne.s32.totalorder %s402_s30, %s1996_s18  ;;  %p2005_p0 = scmp.lt.s32.totalorder %s1996_s18, %s1996_s18 }
  0x77   : > { %p1999_p11 = pnand %p1997_p10, %p2338_p7  ;;  %p2006_p2 = por %p2005_p0, %p2004_p13 }
  0x79   : > { %p2000_p12 = pneg %p1999_p11 }
  0x7b   : > { %p2007_p4 = pnand %p2006_p2, %p2000_p12 }
  0x7d   : > { %2010 = shalt.err (!%p2007_p4)
}
  0x7e   : > { %s2729_s4 = smov 12   ;;  %s2730_s7 = smov 192  }
  0x7f   : > { %1722 = dma.hbm_to_vmem [thread:$0]  (!%p2322_p5), %s2696_s5, 3072, %s402_s30, [#allocation9], %s2730_s7, %s2730_s7, %s2729_s4  }
  0x80   : > { %s2011_s10 = scalar_lea.hbm %s2700_s9, 1024 }
  0x81   : > { %p2012_p6 = scmp.ne.s32.totalorder %s2700_s9, %s2011_s10  ;;  %p2018_p1 = scmp.lt.u32.totalorder %s2011_s10, %s2700_s9 }
  0x83   : > { %p2014_p8 = pnand %p2012_p6, %p2338_p7 }
  0x85   : > { %p2015_p9 = pneg %p2014_p8 }
  0x87   : > { %p2020_p3 = pnand %p2018_p1, %p2015_p9 }
  0x89   : > { %2023 = shalt.err (!%p2020_p3)
}
  0x8a   : > { %s2024_s18 = scalar_lea.vmem %s424_s19, 1024  ;;  %p2032_p13 = scmp.lt.s32.totalorder %s424_s19, %s424_s19 }
  0x8b   : > { %p2025_p10 = scmp.ne.s32.totalorder %s424_s19, %s2024_s18  ;;  %p2033_p0 = scmp.lt.s32.totalorder %s2024_s18, %s2024_s18 }
  0x8d   : > { %p2027_p11 = pnand %p2025_p10, %p2338_p7  ;;  %p2034_p2 = por %p2033_p0, %p2032_p13 }
  0x8f   : > { %p2028_p12 = pneg %p2027_p11 }
  0x91   : > { %p2035_p4 = pnand %p2034_p2, %p2028_p12 }
  0x93   : > { %2038 = shalt.err (!%p2035_p4)
}
  0x94   : > { %1725 = dma.hbm_to_vmem [thread:$0]  (!%p2322_p5), %s2700_s9, 1024, %s424_s19, [#allocation12], %s2200_s15, %s2200_s15, %s2201_s27  }
  0x95   : > { %s1471_s16 = sadd.s32 4294967294, %s2193_s26   ;;  %s42_s14 = sadd.s32 1, %s2189_s25 }
  0x96   : > { %s54_s7 = sadd.s32 1, %s2181_s23  ;;  %p43_p7 = scmp.ge.s32.totalorder %s42_s14, 8 }
  0x97   : > { %p61_p6 = scmp.ne.s32.totalorder %s2181_s23, %s2177_s22  ;;  %p62_p8 = scmp.eq.s32.totalorder %s2193_s26, 0 }
  0x98   : > { %p67_p9 = scmp.ne.s32.totalorder %s2177_s22, %s2173_s21  ;;  %s2756_s14 = smov (%p43_p7, %s42_s14), 0 }
  0x99   : > { %p2454_p1 = por %p62_p8, %p61_p6  ;;  %p2732_p3 = scmp.ne.s32.totalorder %s2723_s28, 0 }
  0x9a   : > { %s49_s27 = ssub.s32 %s2189_s25, %s2756_s14  ;;  %s2734_s19 = sadd.s32 4294967295, %s2193_s26  }
  0x9b   : > { %p2460_p5 = por %p2732_p3, %p67_p9  ;;  %p2468_p10 = scmp.eq.s32.totalorder %s2734_s19, 7 }
  0x9c   : > { %p52_p11 = scmp.eq.s32.totalorder %s49_s27, 0  ;;  %p314_p12 = scmp.eq.s32.totalorder %s1471_s16, 7 }
  0x9d   : > { %s2735_s8 = scalar_select %p2468_p10, 1, 0 }
  0x9e   : > { %p2474_p13 = por %p2468_p10, %p61_p6  ;;  %p1739_p0 = scmp.lt.s32.totalorder %s2193_s26, 8 }
  0x9f   : > { %s2480_s1 = scalar_select %p52_p11, %s2181_s23, %s54_s7  }
  0xa0   : > { %s2736_s12 = scalar_select %p2474_p13, 1, 0 }
  0xa1   : > { %p2482_p2 = por %p314_p12, %p67_p9  ;;  %s440_s20 = sand.u32 1, %s2181_s23  }
  0xa2   : > { %s1479_s17 = sshll.u32 %s440_s20, 3  ;;  %s1480_s13 = sshll.u32 %s2189_s25, 7 }
  0xa3   : > { %s2737_s10 = scalar_select %p2482_p2, 1, 0 }
  0xa4   : > { %s2491_s30 = scalar_lea.hbm %s2691_s0, %s1480_s13  ;;  %s444_s4 = scalar_lea.vmem [#allocation2], %s1479_s17 }
  0xa5   : > { %s452_s16 = sshll.u32 %s444_s4, 4  ;;  %p2497_p4 = pnand %p1739_p0, %p2454_p1  ;;  %s2493_s16 = int_to_ptr.vmem [resolvable:$true] %s452_s16 }
  0xa6   : > { %s441_s27 = scalar_lea.sflag [#allocation3], %s440_s20  ;;  %s2039_s19 = scalar_lea.hbm %s2491_s30, 128 }
  0xa7   : > { %p2040_p7 = scmp.ne.s32.totalorder %s2491_s30, %s2039_s19  ;;  %p2041_p6 = pneg %p2497_p4 }
  0xa8   : > { %s2044_s11 = scalar_lea.hbm %s2691_s0, 1024  ;;  %p2045_p1 = scmp.lt.u32.totalorder %s2491_s30, %s2691_s0 }
  0xa9   : > { %p2042_p8 = pnand %p2041_p6, %p2040_p7  ;;  %p2046_p3 = scmp.lt.u32.totalorder %s2044_s11, %s2039_s19 }
  0xaa   : > { %p2048_p12 = scmp.lt.u32.totalorder %s2039_s19, %s2491_s30 }
  0xab   : > { %p2043_p9 = pneg %p2042_p8  ;;  %p2047_p11 = por %p2046_p3, %p2045_p1 }
  0xad   : > { %p2049_p0 = por %p2048_p12, %p2047_p11 }
  0xaf   : > { %p2050_p2 = pnand %p2049_p0, %p2043_p9 }
  0xb1   : > { %2053 = shalt.err (!%p2050_p2)
}
  0xb2   : > { %s2054_s20 = scalar_lea.vmem %s2493_s16, 128  ;;  %s2204_s4 = smov [#allocation2]  }
  0xb3   : > { %p2055_p7 = scmp.ne.s32.totalorder %s2493_s16, %s2054_s20  ;;  %s2059_s17 = sshll.u32 %s2204_s4, 4  ;;  %s2060_s17 = int_to_ptr.vmem [resolvable:$false] %s2059_s17 }
  0xb4   : > { %s2061_s13 = scalar_lea.vmem %s2060_s17, 256  ;;  %p2062_p10 = scmp.lt.s32.totalorder %s2493_s16, %s2060_s17 }
  0xb5   : > { %p2057_p8 = pnand %p2055_p7, %p2041_p6  ;;  %p2063_p1 = scmp.lt.s32.totalorder %s2061_s13, %s2054_s20 }
  0xb7   : > { %p2058_p13 = pneg %p2057_p8  ;;  %p2064_p3 = por %p2063_p1, %p2062_p10 }
  0xb9   : > { %p2065_p11 = pnand %p2064_p3, %p2058_p13 }
  0xbb   : > { %2068 = shalt.err (!%p2065_p11)
}
  0xbc   : > { %1729 = dma.hbm_to_vmem [thread:$0]  (!%p2497_p4), %s2491_s30, 128, %s2493_s16, %s441_s27  }
  0xbd   : > { %p2739_p2 = scmp.ne.s32.totalorder %s2724_s29, 0 }
  0xbe   : > { %s2529_s19 = sand.u32 (!%p2739_p2), 1, %s2177_s22  }
  0xbf   : > { %461 = sbr.rel (%p2739_p2) target bundleno = 991 (0x3df), region = 64  ;;  %s1482_s11 = sshll.u32 (!%p2739_p2), %s2529_s19, 3 }
  0xc0   : > { %s464_s6 = scalar_lea.sflag (!%p2739_p2), [#allocation3], %s2529_s19  ;;  %s2533_s18 = scalar_lea.vmem (!%p2739_p2), [#allocation2], %s1482_s11 }
  0xc6   : > { %2148 = dma.done.wait (%p2460_p5), %s464_s6, 128  }
  0xc7   : > { %2150 = vsyncadd (%p2460_p5), %s464_s6, 4294967168  ;;  %p2740_p10 = scmp.ne.s32.totalorder %s2723_s28, 0 }
  0xc9   : > { %2152 = dma.done.wait (%p2740_p10), [#allocation6], 1152  }
  0xca   : > { %2154 = vsyncadd (%p2740_p10), [#allocation6], 4294966144 }
  0xcb   : > { %2156 = dma.done.wait (%p2740_p10), [#allocation9], 6144  }
  0xcc   : > { %2158 = vsyncadd (%p2740_p10), [#allocation9], 4294961152 }
  0xcd   : > { %2160 = dma.done.wait (%p2740_p10), [#allocation12], 1024  }
  0xce   : > { %2162 = vsyncadd (%p2740_p10), [#allocation12], 4294966272  ;;  %s2551_s29 = scalar_lea.vmem [#allocation13], %s1482_s11  ;;  %p1489_p5 = scmp.ne.s32.totalorder %s2185_s24, 0 }
  0xcf   : > { %v533_v0 = vld [vmem:[#allocation5] sm:$0xff] (!%p1489_p5) }
  0xd0   : > { %532 = sbr.rel (%p1489_p5) target bundleno = 215 (0xd7), region = 92  ;;  %534 = vst [vmem:[#allocation14] sm:$0xff] (!%p1489_p5), %v533_v0 }
  0xd7 PF: > { %v1809_v1 = vld [vmem:[#allocation7] sm:$0xff]   ;;  %v2205_v2 = vmov 0.0   ;;  %v1810_v3 = vld [vmem:[#allocation7 + $0x8] sm:$0xff]   ;;  %vm2206_vm0 = vmmov 0   ;;  %v1811_v4 = vld [vmem:[#allocation7 + $0x10] sm:$0xff]   ;;  %v2207_v37 = vmov 0  }
  0xd8   : > { %1602 = vmatprep.subr.bf16.mxu0 %v2205_v2  ;;  %1618 = vmatprep.mubr.msk.bf16.mxu0 %vm2206_vm0, %v2205_v2  ;;  %v1817_v5 = vld [vmem:[#allocation8 + $0x4] ss:$12 sps:$4 sm:$0xff]   ;;  %v1819_v6 = vld [vmem:[#allocation8] ss:$12 sps:$4 sm:$0xff]   ;;  %v1812_v7 = vld [vmem:[#allocation7 + $0x18] sm:$0xff]   ;;  %s2741_s7 = sld [smem:[#allocation24_spill]] }
  0xd9   : > { %1603 = vmatpush3.bf16.msra.mxu0 %v1809_v1  ;;  %811 = vmatprep.subr.bf16.mxu1 %v1817_v5  ;;  %v1821_v8 = vld [vmem:[#allocation8 + $0x1c] ss:$12 sps:$4 sm:$0xff]   ;;  %v1823_v9 = vld [vmem:[#allocation8 + $0x18] ss:$12 sps:$4 sm:$0xff]   ;;  %v1825_v10 = vld [vmem:[#allocation8 + $0x34] ss:$12 sps:$4 sm:$0xff]  }
  0xda   : > { %1604 = vmatprep.subr.bf16.mxu0 %v2205_v2  ;;  %812 = vmatpush1.bf16.msra.mxu1 %v1819_v6  ;;  %v1813_v11 = vld [vmem:[#allocation7 + $0x20] sm:$0xff]   ;;  %v1827_v12 = vld [vmem:[#allocation8 + $0x30] ss:$12 sps:$4 sm:$0xff]   ;;  %v1829_v13 = vld [vmem:[#allocation8 + $0x4c] ss:$12 sps:$4 sm:$0xff]   ;;  %s2742_s4 = sld [smem:[#allocation26_spill]] }
  0xdb   : > { %813 = vmatprep.subr.bf16.mxu1 %v1821_v8  ;;  %v1814_v14 = vld [vmem:[#allocation7 + $0x28] sm:$0xff]   ;;  %v1833_v16 = vld [vmem:[#allocation8 + $0x64] ss:$12 sps:$4 sm:$0xff]   ;;  %v1816_v20 = vld [vmem:[#allocation7 + $0x38] sm:$0xff]   ;;  %843 = vmatprep.mubr.bf16.mxu1 %v2207_v37  ;;  %s2743_s11 = sld [smem:[#allocation25_spill]]  ;;  %s2208_s6 = smov [#allocation14]  }
  0xdc   : > { %v1831_v15 = vld [vmem:[#allocation8 + $0x48] ss:$12 sps:$4 sm:$0xff]   ;;  %v1835_v18 = vld [vmem:[#allocation8 + $0x60] ss:$12 sps:$4 sm:$0xff]   ;;  %v1839_v22 = vld [vmem:[#allocation8 + $0x78] ss:$12 sps:$4 sm:$0xff]  }
  0xdd   : > { %1605 = vmatpush3.bf16.msra.mxu0 %v1810_v3  ;;  %v1815_v17 = vld [vmem:[#allocation7 + $0x30] sm:$0xff]   ;;  %v1837_v19 = vld [vmem:[#allocation8 + $0x7c] ss:$12 sps:$4 sm:$0xff]   ;;  %v1824_v27 = vld [vmem:[#allocation8 + $0x20] ss:$12 sps:$4 sm:$0xff]   ;;  %p2744_p4 = scmp.ne.s32.totalorder %s2735_s8, 0 }
  0xde   : > { %1606 = vmatprep.subr.bf16.mxu0 %v2205_v2  ;;  %814 = vmatpush1.bf16.msra.mxu1 %v1823_v9  ;;  %v536_v21 = vld [vmem:[%s2533_s18] sm:$0xff]  ;;  %v1828_v28 = vld [vmem:[#allocation8 + $0x38] ss:$12 sps:$4 sm:$0xff]   ;;  %s1327_s18 = sshll.u32 %s2208_s6, 4  ;;  %s1328_s18 = int_to_ptr.vmem [resolvable:$true] %s1327_s18 }
  0xdf   : > { %815 = vmatprep.subr.bf16.mxu1 %v1825_v10  ;;  %v1841_v23 = vld [vmem:[#allocation8 + $0x94] ss:$12 sps:$4 sm:$0xff]   ;;  %v537_v25 = vpack.c.bf16 %v536_v21, %v536_v21  ;;  %v1843_v26 = vld [vmem:[#allocation8 + $0x90] ss:$12 sps:$4 sm:$0xff]   ;;  %v1844_v32 = vld [vmem:[#allocation8 + $0x98] ss:$12 sps:$4 sm:$0xff]   ;;  %p2076_p12 = scmp.lt.s32.totalorder %s1328_s18, %s1328_s18 }
  0xe0   : > { %v1820_v24 = vld [vmem:[#allocation8 + $0x8] ss:$12 sps:$4 sm:$0xff]   ;;  %v1832_v29 = vld [vmem:[#allocation8 + $0x50] ss:$12 sps:$4 sm:$0xff]   ;;  %v1840_v31 = vld [vmem:[#allocation8 + $0x80] ss:$12 sps:$4 sm:$0xff]  }
  0xe1   : > { %1607 = vmatpush3.bf16.msra.mxu0 %v1811_v4  ;;  %v1836_v30 = vld [vmem:[#allocation8 + $0x68] ss:$12 sps:$4 sm:$0xff]   ;;  %v1845_v33 = vld [vmem:[#allocation8 + $0xac] ss:$12 sps:$4 sm:$0xff]   ;;  %v1848_v35 = vld [vmem:[#allocation8 + $0xb0] ss:$12 sps:$4 sm:$0xff]  }
  0xe2   : > { %1608 = vmatprep.subr.bf16.mxu0 %v2205_v2  ;;  %816 = vmatpush1.bf16.msra.mxu1 %v1827_v12  ;;  %v1847_v34 = vld [vmem:[#allocation8 + $0xa8] ss:$12 sps:$4 sm:$0xff]   ;;  %v1851_v36 = vld [vmem:[#allocation10 + $0x4] ss:$12 sps:$4 sm:$0xff]   ;;  %v1849_v45 = vld [vmem:[#allocation10] ss:$12 sps:$4 sm:$0xff]  }
  0xe3   : > { %817 = vmatprep.subr.bf16.mxu1 %v1829_v13  ;;  %v1490_v38 = vld [vmem:[%s2694_s3] ss:$0 sm:$0xff]  ;;  %v1852_v49 = vld [vmem:[#allocation10 + $0x18] ss:$12 sps:$4 sm:$0xff]   ;;  %v1874_v50 = vld [vmem:[#allocation10 + $0x20] ss:$12 sps:$4 sm:$0xff]  }
  0xe4   : > { %v1870_v46 = vld [vmem:[#allocation10 + $0x8] ss:$12 sps:$4 sm:$0xff]   ;;  %v1855_v52 = vld [vmem:[#allocation10 + $0x30] ss:$12 sps:$4 sm:$0xff]   ;;  %v1875_v53 = vld [vmem:[#allocation10 + $0x38] ss:$12 sps:$4 sm:$0xff]  }
  0xe5   : > { %1609 = vmatpush3.bf16.msra.mxu0 %v1812_v7  ;;  %v1854_v48 = vld [vmem:[#allocation10 + $0x1c] ss:$12 sps:$4 sm:$0xff]   ;;  %v1857_v51 = vld [vmem:[#allocation10 + $0x34] ss:$12 sps:$4 sm:$0xff]   ;;  %v1860_v54 = vld [vmem:[#allocation10 + $0x4c] ss:$12 sps:$4 sm:$0xff]  }
  0xe6   : > { %1610 = vmatprep.subr.bf16.mxu0 %v2205_v2  ;;  %818 = vmatpush1.bf16.msra.mxu1 %v1831_v15  ;;  %v1858_v55 = vld [vmem:[#allocation10 + $0x48] ss:$12 sps:$4 sm:$0xff]   ;;  %v1876_v56 = vld [vmem:[#allocation10 + $0x50] ss:$12 sps:$4 sm:$0xff]   ;;  %v1861_v58 = vld [vmem:[#allocation10 + $0x60] ss:$12 sps:$4 sm:$0xff]  }
  0xe7   : > { %819 = vmatprep.subr.bf16.mxu1 %v1833_v16  ;;  %v1863_v57 = vld [vmem:[#allocation10 + $0x64] ss:$12 sps:$4 sm:$0xff]   ;;  %v1877_v59 = vld [vmem:[#allocation10 + $0x68] ss:$12 sps:$4 sm:$0xff]   ;;  %v1878_v62 = vld [vmem:[#allocation10 + $0x80] ss:$12 sps:$4 sm:$0xff]  }
  0xe8   : > { %v1866_v60 = vld [vmem:[#allocation10 + $0x7c] ss:$12 sps:$4 sm:$0xff]   ;;  %v1864_v61 = vld [vmem:[#allocation10 + $0x78] ss:$12 sps:$4 sm:$0xff]   ;;  %v1869_v63 = vld [vmem:[#allocation10 + $0x94] ss:$12 sps:$4 sm:$0xff]  }
  0xe9   : > { %1611 = vmatpush3.bf16.msra.mxu0 %v1813_v11  ;;  %v1867_v0 = vld [vmem:[#allocation10 + $0x90] ss:$12 sps:$4 sm:$0xff]   ;;  %v1879_v1 = vld [vmem:[#allocation10 + $0x98] ss:$12 sps:$4 sm:$0xff]   ;;  %v1871_v4 = vld [vmem:[#allocation10 + $0xa8] ss:$12 sps:$4 sm:$0xff]  }
  0xea   : > { %1612 = vmatprep.subr.bf16.mxu0 %v2205_v2  ;;  %820 = vmatpush1.bf16.msra.mxu1 %v1835_v18  ;;  %v1873_v3 = vld [vmem:[#allocation10 + $0xac] ss:$12 sps:$4 sm:$0xff]   ;;  %v2587_v5 = vld [vmem:[#allocation14] sm:$0xff]  ;;  %v1881_v8 = vld [vmem:[#allocation11] sm:$0xff]   ;;  %s2069_s28 = scalar_lea.vmem %s1328_s18, 128 }
  0xeb   : > { %821 = vmatprep.subr.bf16.mxu1 %v1837_v19  ;;  %v1880_v6 = vld [vmem:[#allocation10 + $0xb0] ss:$12 sps:$4 sm:$0xff]   ;;  %v892_v7 = vpack.c.bf16 %v2587_v5, %v2587_v5  ;;  %v1882_v9 = vld [vmem:[#allocation11 + $0x8] sm:$0xff]   ;;  %v1885_v12 = vld [vmem:[#allocation11 + $0x20] sm:$0xff]   ;;  %p2070_p13 = scmp.ne.s32.totalorder %s1328_s18, %s2069_s28  ;;  %p2077_p0 = scmp.lt.s32.totalorder %s2069_s28, %s2069_s28 }
  0xec   : > { %v1883_v10 = vld [vmem:[#allocation11 + $0x10] sm:$0xff]   ;;  %v1884_v11 = vld [vmem:[#allocation11 + $0x18] sm:$0xff]   ;;  %v1886_v13 = vld [vmem:[#allocation11 + $0x28] sm:$0xff]  }
  0xed   : > { %1613 = vmatpush3.bf16.msra.mxu0 %v1814_v14  ;;  %v1887_v14 = vld [vmem:[#allocation11 + $0x30] sm:$0xff]   ;;  %v1888_v15 = vld [vmem:[#allocation11 + $0x38] sm:$0xff]   ;;  %p2071_p6 = pnand %p2070_p13, %p2744_p4  ;;  %p2078_p7 = por %p2077_p0, %p2076_p12 }
  0xee   : > { %1614 = vmatprep.subr.bf16.mxu0 %v2205_v2  ;;  %822 = vmatpush1.bf16.msra.mxu1 %v1839_v22 }
  0xef   : > { %823 = vmatprep.subr.bf16.mxu1 %v1841_v23  ;;  %p2072_p9 = pneg %p2071_p6 }
  0xf1   : > { %1615 = vmatpush3.bf16.msra.mxu0 %v1815_v17  ;;  %p2079_p8 = pnand %p2078_p7, %p2072_p9 }
  0xf2   : > { %1616 = vmatprep.subr.bf16.mxu0 %v2205_v2  ;;  %824 = vmatpush1.bf16.msra.mxu1 %v1843_v26 }
  0xf3   : > { %825 = vmatprep.subr.bf16.mxu1 %v1845_v33 }
  0xf5   : > { %1617 = vmatpush3.bf16.msra.mxu0 %v1816_v20 }
  0xf6   : > { %1622 = vmatprep.subr.bf16.mxu0 %v2205_v2  ;;  %826 = vmatpush1.bf16.msra.mxu1 %v1847_v34 }
  0xf7   : > { %1053 = vmatprep.subr.bf16.mxu1 %v1851_v36 }
  0xf8   : > { %1619 = vmatmul.mubr.bf16.vlgmr.msra.gmra.mrb[0].mxu0 %v537_v25 }
  0xf9   : > { %1623 = vmatpush3.bf16.msra.mxu0 %v1820_v24  ;;  %1638 = vmatprep.mubr.msk.bf16.mxu0 %vm2206_vm0, %v2205_v2  ;;  %v1138_v24 = vlaneseq }
  0xfa   : > { %1624 = vmatprep.subr.bf16.mxu0 %v2205_v2 }
  0xfb   : > { %v1139_v25 = vshrl.u32 %v1138_v24, 7 }
  0xfd   : > { %1625 = vmatpush3.bf16.msra.mxu0 %v1824_v27  ;;  %v1140_v26 = vsub.s32 0, %v1139_v25  ;;  %v1136_v27 = vld [vmem:[%s2741_s7] sm:$0x3] }
  0xfe   : > { %1626 = vmatprep.subr.bf16.mxu0 %v2205_v2 }
 0x101   : > { %1627 = vmatpush3.bf16.msra.mxu0 %v1828_v28  ;;  %v1144_v28 = vsub.s32 1, %v1139_v25 }
 0x102   : > { %1628 = vmatprep.subr.bf16.mxu0 %v2205_v2 }
 0x105   : > { %1629 = vmatpush3.bf16.msra.mxu0 %v1832_v29  ;;  %v1141_v29 = vrot.slane %v1136_v27, %v1140_v26 }
 0x106   : > { %1630 = vmatprep.subr.bf16.mxu0 %v2205_v2 }
 0x109   : > { %1631 = vmatpush3.bf16.msra.mxu0 %v1836_v30 }
 0x10a   : > { %1632 = vmatprep.subr.bf16.mxu0 %v2205_v2 }
 0x10d   : > { %1633 = vmatpush3.bf16.msra.mxu0 %v1840_v31 }
 0x10e   : > { %1634 = vmatprep.subr.bf16.mxu0 %v2205_v2 }
 0x111   : > { %1635 = vmatpush3.bf16.msra.mxu0 %v1844_v32 }
 0x112   : > { %1636 = vmatprep.subr.bf16.mxu0 %v2205_v2 }
 0x115   : > { %1637 = vmatpush3.bf16.msra.mxu0 %v1848_v35  ;;  %v1145_v35 = vrot.slane %v1136_v27, %v1144_v28 }
 0x116   : > { %1642 = vmatprep.subr.bf16.mxu0 %v2205_v2 }
 0x1cb   : > { %v643_v39 = vpop.f32.mrb[0].mxu0 }
 0x1cc   : > { %v644_v40 = vadd.f32 %v1490_v38, %v643_v39  ;;  %v1620_v41 = vpop.f32.mrb[1].mxu0 }
 0x1cd   : > { %v646_v42 = vpop.f32.mrb[2].mxu0 }
 0x1ce   : > { %v649_v43 = vmax.f32 %v644_v40, 0.0  ;;  %v1621_v44 = vpop.f32.mrb[3].mxu0 }
 0x1d0   : > { %v650_v47 = vpack.c.bf16 %v649_v43, %v649_v43 }
 0x1d2   : > { %844 = vmatmul.mubr.bf16.vlgmr.msra.gmra.mrb[0].mxu1 %v650_v47  ;;  %1639 = vmatmul.mubr.bf16.vlgmr.msra.gmra.mrb[4].mxu0 %v650_v47  ;;  %v1550_v47 = vld [vmem:[%s2742_s4] ss:$0 sm:$0xff] }
 0x1d3   : > { %1054 = vmatpush1.bf16.msra.mxu1 %v1849_v45  ;;  %1643 = vmatpush3.bf16.msra.mxu0 %v1870_v46 }
 0x1d4   : > { %1055 = vmatprep.subr.bf16.mxu1 %v1854_v48  ;;  %1644 = vmatprep.subr.bf16.mxu0 %v2205_v2 }
 0x1d5   : > { %1085 = vmatprep.mubr.bf16.mxu1 %v2207_v37  ;;  %1658 = vmatprep.mubr.msk.bf16.mxu0 %vm2206_vm0, %v2205_v2 }
 0x1d7   : > { %1056 = vmatpush1.bf16.msra.mxu1 %v1852_v49  ;;  %1645 = vmatpush3.bf16.msra.mxu0 %v1874_v50  ;;  %v1549_v50 = vld [vmem:[%s2743_s11] ss:$0 sm:$0xff] }
 0x1d8   : > { %1057 = vmatprep.subr.bf16.mxu1 %v1857_v51  ;;  %1646 = vmatprep.subr.bf16.mxu0 %v2205_v2 }
 0x1db   : > { %1058 = vmatpush1.bf16.msra.mxu1 %v1855_v52  ;;  %1647 = vmatpush3.bf16.msra.mxu0 %v1875_v53 }
 0x1dc   : > { %1059 = vmatprep.subr.bf16.mxu1 %v1860_v54  ;;  %1648 = vmatprep.subr.bf16.mxu0 %v2205_v2 }
 0x1df   : > { %1060 = vmatpush1.bf16.msra.mxu1 %v1858_v55  ;;  %1649 = vmatpush3.bf16.msra.mxu0 %v1876_v56 }
 0x1e0   : > { %1061 = vmatprep.subr.bf16.mxu1 %v1863_v57  ;;  %1650 = vmatprep.subr.bf16.mxu0 %v2205_v2 }
 0x1e3   : > { %1062 = vmatpush1.bf16.msra.mxu1 %v1861_v58  ;;  %1651 = vmatpush3.bf16.msra.mxu0 %v1877_v59 }
 0x1e4   : > { %1063 = vmatprep.subr.bf16.mxu1 %v1866_v60  ;;  %1652 = vmatprep.subr.bf16.mxu0 %v2205_v2 }
 0x1e7   : > { %1064 = vmatpush1.bf16.msra.mxu1 %v1864_v61  ;;  %1653 = vmatpush3.bf16.msra.mxu0 %v1878_v62 }
 0x1e8   : > { %1065 = vmatprep.subr.bf16.mxu1 %v1869_v63  ;;  %1654 = vmatprep.subr.bf16.mxu0 %v2205_v2 }
 0x1eb   : > { %1066 = vmatpush1.bf16.msra.mxu1 %v1867_v0  ;;  %1655 = vmatpush3.bf16.msra.mxu0 %v1879_v1 }
 0x1ec   : > { %1067 = vmatprep.subr.bf16.mxu1 %v1873_v3  ;;  %1656 = vmatprep.subr.bf16.mxu0 %v2205_v2 }
 0x1ef   : > { %1068 = vmatpush1.bf16.msra.mxu1 %v1871_v4  ;;  %1657 = vmatpush3.bf16.msra.mxu0 %v1880_v6 }
 0x1f0   : > { %1662 = vmatprep.subr.bf16.mxu1 %v2205_v2 }
 0x1f2   : > { %1086 = vmatmul.mubr.bf16.vlgmr.msra.gmra.mrb[4].mxu1 %v892_v7  ;;  %1659 = vmatmul.mubr.bf16.vlgmr.msra.gmra.mrb[8].mxu0 %v892_v7 }
 0x1f3   : > { %1678 = vmatprep.mubr.msk.bf16.mxu1 %vm2206_vm0, %v2205_v2  ;;  %1663 = vmatpush3.bf16.msra.mxu1 %v1881_v8 }
 0x1f4   : > { %1664 = vmatprep.subr.bf16.mxu1 %v2205_v2 }
 0x1f7   : > { %1665 = vmatpush3.bf16.msra.mxu1 %v1882_v9 }
 0x1f8   : > { %1666 = vmatprep.subr.bf16.mxu1 %v2205_v2 }
 0x1fb   : > { %1667 = vmatpush3.bf16.msra.mxu1 %v1883_v10 }
 0x1fc   : > { %1668 = vmatprep.subr.bf16.mxu1 %v2205_v2 }
 0x1ff   : > { %1669 = vmatpush3.bf16.msra.mxu1 %v1884_v11 }
 0x200   : > { %1670 = vmatprep.subr.bf16.mxu1 %v2205_v2 }
 0x203   : > { %1671 = vmatpush3.bf16.msra.mxu1 %v1885_v12 }
 0x204   : > { %1672 = vmatprep.subr.bf16.mxu1 %v2205_v2 }
 0x207   : > { %1673 = vmatpush3.bf16.msra.mxu1 %v1886_v13 }
 0x208   : > { %1674 = vmatprep.subr.bf16.mxu1 %v2205_v2 }
 0x20b   : > { %1675 = vmatpush3.bf16.msra.mxu1 %v1887_v14 }
 0x20c   : > { %1676 = vmatprep.subr.bf16.mxu1 %v2205_v2 }
 0x20f   : > { %1677 = vmatpush3.bf16.msra.mxu1 %v1888_v15 }
 0x2a5   : > { %v845_v16 = vpop.f32.mrb[0].mxu1  ;;  %v886_v17 = vpop.f32.mrb[4].mxu0 }
 0x2a6   : > { %v847_v18 = vpop.f32.mrb[1].mxu1  ;;  %v1640_v19 = vpop.f32.mrb[5].mxu0  ;;  %v1169_v52 = vadd.f32 %v1549_v50, %v886_v17 }
 0x2a7   : > { %v849_v20 = vpop.f32.mrb[2].mxu1  ;;  %v889_v21 = vpop.f32.mrb[6].mxu0 }
 0x2a8   : > { %v850_v22 = vpop.f32.mrb[3].mxu1  ;;  %v1641_v23 = vpop.f32.mrb[7].mxu0 }
 0x2c5   : > { %v1087_v30 = vpop.f32.mrb[4].mxu1  ;;  %v1128_v2 = vpop.f32.mrb[8].mxu0 }
 0x2c6   : > { %v1134_v31 = vadd.f32 %v1087_v30, %v845_v16  ;;  %v1089_v32 = vpop.f32.mrb[5].mxu1  ;;  %v1660_v33 = vpop.f32.mrb[9].mxu0  ;;  %v1177_v49 = vadd.f32 %v1550_v47, %v1128_v2 }
 0x2c7   : > { %v1135_v34 = vadd.f32 %v1089_v32, %v847_v18  ;;  %v1091_v36 = vpop.f32.mrb[6].mxu1  ;;  %v1131_v37 = vpop.f32.mrb[10].mxu0 }
 0x2c8   : > { %v1148_v38 = vadd.f32 %v1141_v29, %v1134_v31  ;;  %v1092_v39 = vpop.f32.mrb[7].mxu1  ;;  %v1661_v40 = vpop.f32.mrb[11].mxu0 }
 0x2c9   : > { %v1149_v42 = vadd.f32 %v1145_v35, %v1135_v34 }
 0x2ca   : > { %v1547_v41 = vmul.f32 -1.442695, %v1148_v38 }
 0x2cb   : > { %v1548_v43 = vmul.f32 -1.442695, %v1149_v42 }
 0x2cc   : > { %1889 = vpow2.f32 %v1547_v41 }
 0x2cd   : > { %1891 = vpow2.f32 %v1548_v43 }
 0x2d6   : > { %v1890_v44 = vpop.eup %1889 }
 0x2d7   : > { %v1156_v45 = vadd.f32 1.0, %v1890_v44  ;;  %v1892_v46 = vpop.eup %1891 }
 0x2d8   : > { %v1157_v48 = vadd.f32 1.0, %v1892_v46 }
 0x2d9   : > { %1893 = vrcp.f32 %v1156_v45 }
 0x2da   : > { %1895 = vrcp.f32 %v1157_v48 }
 0x2e3   : > { %v1894_v51 = vpop.eup %1893 }
 0x2e4   : > { %v1178_v53 = vmul.f32 %v1894_v51, %v1177_v49  ;;  %v1896_v55 = vpop.eup %1895 }
 0x2e5   : > { %v1181_v56 = vsub.f32 1.0, %v1896_v55  ;;  %v1183_v59 = vmul.f32 %v1896_v55, %v2587_v5 }
 0x2e6   : > { %v1179_v54 = vadd.f32 %v1178_v53, %v1169_v52 }
 0x2e8   : > { %1897 = vtanh.f32 %v1179_v54 }
 0x2f2   : > { %v1898_v57 = vpop.eup %1897 }
 0x2f3   : > { %v1182_v58 = vmul.f32 %v1898_v57, %v1181_v56 }
 0x2f5   : > { %v1184_v60 = vadd.f32 %v1183_v59, %v1182_v58 }
 0x2f7   : > { %v1185_v61 = vpack.c.bf16 %v1184_v60, %v1184_v60  ;;  %1298 = vst [vmem:[#allocation14] sm:$0xff] %v1184_v60 }
 0x2f9   : > { %1679 = vmatmul.mubr.bf16.vlgmr.msra.gmra.mrb[8].mxu1 %v1185_v61 }
 0x2fa   : > { %2082 = shalt.err (!%p2079_p8)
}
 0x2fb   : > { %s2745_s16 = sld [smem:[#allocation29_spill]] }
 0x301   : > { %s2083_s7 = scalar_lea.hbm %s2745_s16, 128 }
 0x302   : > { %p2084_p1 = scmp.ne.s32.totalorder %s2745_s16, %s2083_s7  ;;  %p2089_p2 = scmp.lt.u32.totalorder %s2083_s7, %s2745_s16 }
 0x304   : > { %p2085_p3 = pnand %p2084_p1, %p2744_p4 }
 0x306   : > { %p2086_p11 = pneg %p2085_p3 }
 0x308   : > { %p2091_p10 = pnand %p2089_p2, %p2086_p11 }
 0x30a   : > { %2094 = shalt.err (!%p2091_p10)
}
 0x30b   : > { %1706 = dma.vmem_to_hbm [thread:$0]  (%p2744_p4), %s1328_s18, 128, %s2745_s16, [#allocation15]  }
 0x30c   : > { %s2746_s15 = sld [smem:[#allocation27_spill]]  ;;  %s1561_s30 = sshll.u32 %s2185_s24, 7 }
 0x30d   : > { %s1314_s27 = sshll.u32 %s2551_s29, 4  ;;  %s2747_s4 = sld [smem:[#allocation28_spill]]  ;;  %s2640_s27 = int_to_ptr.vmem [resolvable:$true] %s1314_s27 }
 0x30e   : > { %s1300_s18 = scalar_lea.sflag [#allocation4], %s2529_s19  ;;  %s2095_s13 = scalar_lea.vmem %s2640_s27, 128 }
 0x30f   : > { %p2096_p5 = scmp.ne.s32.totalorder %s2640_s27, %s2095_s13  ;;  %p2748_p13 = scmp.ne.s32.totalorder %s2736_s12, 0 }
 0x310   : > { %s2209_s24 = smov [#allocation13]  }
 0x311   : > { %p2097_p6 = pnand %p2096_p5, %p2748_p13  ;;  %s2099_s11 = sshll.u32 %s2209_s24, 4  ;;  %s2100_s11 = int_to_ptr.vmem [resolvable:$false] %s2099_s11 }
 0x312   : > { %v1551_v62 = vld [vmem:[%s2746_s15] ss:$0 sm:$0xff]  ;;  %s2101_s6 = scalar_lea.vmem %s2100_s11, 256  ;;  %p2102_p12 = scmp.lt.s32.totalorder %s2640_s27, %s2100_s11 }
 0x313   : > { %s2638_s17 = scalar_lea.hbm %s2747_s4, %s1561_s30  ;;  %p2098_p9 = pneg %p2097_p6 }
 0x314   : > { %p2103_p0 = scmp.lt.s32.totalorder %s2101_s6, %s2095_s13 }
 0x316   : > { %p2104_p7 = por %p2103_p0, %p2102_p12 }
 0x318   : > { %p2105_p8 = pnand %p2104_p7, %p2098_p9 }
 0x3cc   : > { %v1291_v63 = vpop.f32.mrb[8].mxu1 }
 0x3cd   : > { %v1292_v0 = vadd.f32 %v1551_v62, %v1291_v63  ;;  %v1680_v1 = vpop.f32.mrb[9].mxu1 }
 0x3ce   : > { %v1294_v3 = vpop.f32.mrb[10].mxu1 }
 0x3cf   : > { %1297 = vst [vmem:[%s2551_s29] sm:$0xff] %v1292_v0  ;;  %v1681_v4 = vpop.f32.mrb[11].mxu1 }
 0x3d0   : > { %2108 = shalt.err (!%p2105_p8)
}
 0x3d1   : > { %s2109_s19 = scalar_lea.hbm %s2638_s17, 128  ;;  %s2113_s15 = scalar_lea.hbm %s2747_s4, 1024 }
 0x3d2   : > { %p2110_p1 = scmp.ne.s32.totalorder %s2638_s17, %s2109_s19  ;;  %p2114_p2 = scmp.lt.u32.totalorder %s2638_s17, %s2747_s4 }
 0x3d3   : > { %p2115_p10 = scmp.lt.u32.totalorder %s2113_s15, %s2109_s19  ;;  %p2117_p6 = scmp.lt.u32.totalorder %s2109_s19, %s2638_s17 }
 0x3d4   : > { %p2111_p3 = pnand %p2110_p1, %p2748_p13 }
 0x3d5   : > { %p2116_p5 = por %p2115_p10, %p2114_p2 }
 0x3d6   : > { %p2112_p11 = pneg %p2111_p3 }
 0x3d7   : > { %p2118_p9 = por %p2117_p6, %p2116_p5 }
 0x3d9   : > { %p2119_p12 = pnand %p2118_p9, %p2112_p11 }
 0x3db   : > { %2122 = shalt.err (!%p2119_p12)
}
 0x3dc   : > { %1704 = dma.vmem_to_hbm [thread:$0]  (%p2748_p13), %s2640_s27, 128, %s2638_s17, %s1300_s18  }
 0x3dd   : > { %2164 = dma.done.wait (%p2744_p4), [#allocation15], 128  }
 0x3de   : > { %2166 = vsyncadd (%p2744_p4), [#allocation15], 4294967168 }
 0x3df PF: > { %p1747_p0 = scmp.ge.s32.totalorder %s2193_s26, 2  ;;  %s1343_s20 = sand.u32 1, %s2173_s21  }
 0x3e0   : > { %p2749_p7 = scmp.ne.s32.totalorder %s2737_s10, 0  ;;  %s1344_s13 = scalar_lea.sflag [#allocation4], %s1343_s20 }
 0x3e2   : > { %p1731_p8 = pnand %p1747_p0, %p2749_p7 }
 0x3e4   : > { %2168 = dma.done.wait (!%p1731_p8), %s1344_s13, 128  }
 0x3e5   : > { %2170 = vsyncadd (!%p1731_p8), %s1344_s13, 4294967168  ;;  %s33_s26 = sadd.s32 1, %s2193_s26   ;;  %s2750_s21 = smov %s2177_s22 }
 0x3e6   : > { %p30_p1 = scmp.ge.s32.totalorder %s33_s26, 10   ;;  %s2751_s22 = smov %s2181_s23 }
 0x3e7   : > { %s2752_s23 = smov %s2480_s1  ;;  %s2753_s24 = smov %s2189_s25 }
 0x3e8   : > { %s2754_s25 = smov %s2756_s14  ;;  %32 = sbr.rel (!%p30_p1) target bundleno = 19 (0x13), region = 143 }
 0x3ef   :  { %1349 = vsyncpa [#allocation3], 1 }
 0x3f0   :  { %1351 = vsyncpa [#allocation3 + $0x1], 1 }
 0x3f1   :  { %1352 = vsyncpa [#allocation6], 1 }
 0x3f2   :  { %1353 = vsyncpa [#allocation9], 1 }
 0x3f3   :  { %1354 = vsyncpa [#allocation12], 1 }
 0x3f4   :  { %1355 = vsyncpa [#allocation4], 1 }
 0x3f5   :  { %1357 = vsyncpa [#allocation4 + $0x1], 1 }
 0x3f6   :  { %1358 = vsyncpa [#allocation15], 1 }

</bundles_post_ra>
